<compile_context>
chip_gen: v5e
topology: v5e:2x2
jax: 0.10.0
libtpu: 0.0.40
codegen_flags: <defaults>
</compile_context>

<pallas_src>
import functools

import jax
import jax.numpy as jnp
from jax.experimental import pallas as pl
from jax.experimental.pallas import tpu as pltpu

BN_EPS = 1e-5
_LANE = 128


def _round_up(x, m):
    return (x + m - 1) // m * m


def _make_upblock_kernel(cin, use_mxu):
    """Fused (1x1 conv with folded BN affine) + ReLU on a channels-first tile."""

    def kernel(x_ref, w_ref, t_ref, o_ref):
        # x_ref: (Cin,  Tm)   activations; lane axis = spatial positions (lane-dense)
        # w_ref: (Cout, Cin)  BN-scaled conv weight  W' = s * W
        # t_ref: (Cout, 1)    fused per-channel bias t = beta + (b - mean_z) * s
        # o_ref: (Cout, Tm)
        x = x_ref[...]
        w = w_ref[...]
        t = t_ref[...]
        if use_mxu:
            acc = jnp.dot(w, x, preferred_element_type=jnp.float32) + t
        else:
            # Tiny contraction: VPU broadcast-MAC, skip the MXU entirely.
            acc = w[:, 0:1] * x[0:1, :] + t
            for c in range(1, cin):
                acc = acc + w[:, c : c + 1] * x[c : c + 1, :]
        o_ref[...] = jnp.maximum(acc, 0.0).astype(o_ref.dtype)

    return kernel


def _bilinear_upsample_x2_align_corners(x):
    """F.interpolate(x, scale_factor=2, mode='bilinear', align_corners=True) in NCHW."""
    # TODO(synk): kept as XLA glue; the x2 lerp could be pulled into the Pallas pipeline
    # to save one HBM round trip, but BN statistics must still be taken over the
    # upsampled field for exact PyTorch semantics, so it stays outside.
    N, C, H, W = x.shape
    Ho, Wo = 2 * H, 2 * W

    def coords(in_size, out_size):
        if out_size == 1:
            src = jnp.zeros((1,), jnp.float32)
        else:
            src = jnp.arange(out_size, dtype=jnp.float32) * (
                (in_size - 1) / (out_size - 1)
            )
        i0 = jnp.clip(jnp.floor(src).astype(jnp.int32), 0, in_size - 1)
        i1 = jnp.clip(i0 + 1, 0, in_size - 1)
        frac = src - i0.astype(jnp.float32)
        return i0, i1, frac

    h0, h1, fh = coords(H, Ho)
    w0, w1, fw = coords(W, Wo)

    xh = (
        x[:, :, h0, :] * (1.0 - fh)[None, None, :, None]
        + x[:, :, h1, :] * fh[None, None, :, None]
    )
    out = (
        xh[:, :, :, w0] * (1.0 - fw)[None, None, None, :]
        + xh[:, :, :, w1] * fw[None, None, None, :]
    )
    return out


@functools.partial(jax.jit, static_argnames=("upsample",))
def upblock_forward(x_nchw, conv_w, conv_b, bn_gamma, bn_beta, *, upsample=False):
    """UpBlock forward.

    x_nchw: (N, Cin, H, W) float32
    conv_w: (Cout, Cin)  (1x1 kernel squeezed)
    conv_b, bn_gamma, bn_beta: (Cout,)
    returns (N, Cout, H', W') with H' = 2H if upsample else H.
    """
    if upsample:
        x_nchw = _bilinear_upsample_x2_align_corners(x_nchw)

    N, Cin, H, W = x_nchw.shape
    Cout = conv_w.shape[0]
    HW = H * W
    M = N * HW

    # Free reshape, no transpose: channels-first (N, Cin, HW).
    x3 = x_nchw.reshape(N, Cin, HW).astype(jnp.float32)
    w = conv_w.astype(jnp.float32)          # (Cout, Cin)
    b = conv_b.astype(jnp.float32)
    gamma = bn_gamma.astype(jnp.float32)
    beta = bn_beta.astype(jnp.float32)

    # ---- Fold training-mode BatchNorm into a per-channel affine ------------------
    # z = W x + b is linear, so per-channel batch stats of z follow from tiny Cin x Cin
    # input moments (biased variance, exactly like PyTorch normalization).
    mean_x = jnp.mean(x3, axis=(0, 2))                                       # (Cin,)
    exx = jnp.einsum("ncm,ndm->cd", x3, x3,
                     preferred_element_type=jnp.float32) / M                 # (Cin, Cin)
    cov_x = exx - jnp.outer(mean_x, mean_x)
    mean_z = w @ mean_x + b                                                  # (Cout,)
    var_z = jnp.maximum(jnp.einsum("oc,cd,od->o", w, cov_x, w), 0.0)         # (Cout,)
    s = gamma * jax.lax.rsqrt(var_z + BN_EPS)                                # (Cout,)
    w_scaled = w * s[:, None]                                                # (Cout, Cin)
    t = (beta + (b - mean_z) * s).reshape(Cout, 1)                           # (Cout, 1)

    # ---- Tiled, lane-dense fused kernel over the spatial axis ---------------------
    tm = 512
    if HW < tm:
        tm = _round_up(HW, _LANE)
    hw_pad = _round_up(HW, tm)
    if hw_pad != HW:
        x3 = jnp.pad(x3, ((0, 0), (0, 0), (0, hw_pad - HW)))

    grid = (N, hw_pad // tm)
    kernel = _make_upblock_kernel(Cin, use_mxu=Cin > 16)

    out3 = pl.pallas_call(
        kernel,
        out_shape=jax.ShapeDtypeStruct((N, Cout, hw_pad), jnp.float32),
        grid=grid,
        in_specs=[
            pl.BlockSpec((None, Cin, tm), lambda n, m: (n, 0, m)),   # activations
            pl.BlockSpec((Cout, Cin), lambda n, m: (0, 0)),          # scaled weight
            pl.BlockSpec((Cout, 1), lambda n, m: (0, 0)),            # fused bias
        ],
        out_specs=pl.BlockSpec((None, Cout, tm), lambda n, m: (n, 0, m)),
        compiler_params=pltpu.CompilerParams(
            dimension_semantics=("parallel", "parallel"),
            vmem_limit_bytes=32 * 1024 * 1024,
        ),
    )(x3, w_scaled, t)

    if hw_pad != HW:
        out3 = out3[:, :, :HW]
    return out3.reshape(N, Cout, H, W)


def _reference_forward(x_nchw, conv_w, conv_b, bn_gamma, bn_beta, upsample):
    """Pure-JAX reference mirroring the PyTorch forward (training-mode BN)."""
    if upsample:
        x_nchw = _bilinear_upsample_x2_align_corners(x_nchw)
    z = jnp.einsum("nchw,oc->nohw", x_nchw, conv_w) + conv_b[None, :, None, None]
    mean = jnp.mean(z, axis=(0, 2, 3), keepdims=True)
    var = jnp.mean((z - mean) ** 2, axis=(0, 2, 3), keepdims=True)
    z_hat = (z - mean) / jnp.sqrt(var + BN_EPS)
    y = z_hat * bn_gamma[None, :, None, None] + bn_beta[None, :, None, None]
    return jnp.maximum(y, 0.0)


if __name__ == "__main__":
    # Small shapes consistent with the module: N=2, inplanes=4, H=W=16, planes=8.
    N, Cin, H, W = 2, 4, 16, 16
    Cout = 8

    key = jax.random.PRNGKey(0)
    kx, kw, kb, kg, kbeta = jax.random.split(key, 5)

    x = jax.random.normal(kx, (N, Cin, H, W), dtype=jnp.float32)
    # nn.Conv2d(inplanes, planes, 1, 1): weight (planes, inplanes, 1, 1), bias (planes,)
    conv_w = 0.5 * jax.random.normal(kw, (Cout, Cin), dtype=jnp.float32)
    conv_b = 0.1 * jax.random.normal(kb, (Cout,), dtype=jnp.float32)
    # nn.BatchNorm2d(planes): weight (gamma) / bias (beta), perturbed away from 1/0
    bn_gamma = 1.0 + 0.1 * jax.random.normal(kg, (Cout,), dtype=jnp.float32)
    bn_beta = 0.1 * jax.random.normal(kbeta, (Cout,), dtype=jnp.float32)

    for upsample in (True, False):
        out = upblock_forward(x, conv_w, conv_b, bn_gamma, bn_beta, upsample=upsample)
        out = jax.block_until_ready(out)
        ref = _reference_forward(x, conv_w, conv_b, bn_gamma, bn_beta, upsample)
        scale = 2 if upsample else 1
        assert out.shape == (N, Cout, scale * H, scale * W), out.shape
        max_err = float(jnp.max(jnp.abs(out - ref)))
        assert jnp.allclose(out, ref, atol=1e-4, rtol=1e-4), max_err

    print("KERNEL_OK")
</pallas_src>

<mosaic_0001>
module attributes {stable_mosaic.version = 11 : i64} {
  func.func @kernel(%arg0: i32, %arg1: i32, %arg2: memref<1x4x512xf32, #tpu.memory_space<vmem>>, %arg3: memref<8x4xf32, #tpu.memory_space<vmem>>, %arg4: memref<8x1xf32, #tpu.memory_space<vmem>>, %arg5: memref<1x8x512xf32, #tpu.memory_space<vmem>>) attributes {dimension_semantics = [#tpu.dimension_semantics<parallel>, #tpu.dimension_semantics<parallel>], iteration_bounds = array<i64: 2, 2>, scalar_prefetch = 0 : i64, scratch_operands = 0 : i64, tpu.core_type = #tpu.core_type<tc>, window_params = [{transform_indices = @transform_0, window_bounds = array<i64: 1, 4, 512>}, {pipeline_mode = #tpu.pipeline_mode<synchronous>, transform_indices = @transform_1, window_bounds = array<i64: 8, 4>}, {pipeline_mode = #tpu.pipeline_mode<synchronous>, transform_indices = @transform_2, window_bounds = array<i64: 8, 1>}, {transform_indices = @transform_3, window_bounds = array<i64: 1, 8, 512>}]} {
    %c0 = arith.constant 0 : index
    %c0_0 = arith.constant 0 : index
    %c0_1 = arith.constant 0 : index
    %0 = vector.load %arg2[%c0, %c0_0, %c0_1] : memref<1x4x512xf32, #tpu.memory_space<vmem>>, vector<1x4x512xf32>
    %1 = vector.shape_cast %0 : vector<1x4x512xf32> to vector<4x512xf32>
    %c0_2 = arith.constant 0 : index
    %c0_3 = arith.constant 0 : index
    %2 = vector.load %arg3[%c0_2, %c0_3] : memref<8x4xf32, #tpu.memory_space<vmem>>, vector<8x4xf32>
    %c0_4 = arith.constant 0 : index
    %c0_5 = arith.constant 0 : index
    %3 = vector.load %arg4[%c0_4, %c0_5] : memref<8x1xf32, #tpu.memory_space<vmem>>, vector<8x1xf32>
    %4 = vector.extract_strided_slice %2 {offsets = [0, 0], sizes = [8, 1], strides = [1, 1]} : vector<8x4xf32> to vector<8x1xf32>
    %5 = vector.extract_strided_slice %1 {offsets = [0, 0], sizes = [1, 512], strides = [1, 1]} : vector<4x512xf32> to vector<1x512xf32>
    %6 = vector.broadcast %4 : vector<8x1xf32> to vector<8x512xf32>
    %7 = vector.broadcast %5 : vector<1x512xf32> to vector<8x512xf32>
    %8 = arith.mulf %6, %7 : vector<8x512xf32>
    %9 = vector.broadcast %3 : vector<8x1xf32> to vector<8x512xf32>
    %10 = arith.addf %8, %9 : vector<8x512xf32>
    %11 = vector.extract_strided_slice %2 {offsets = [0, 1], sizes = [8, 1], strides = [1, 1]} : vector<8x4xf32> to vector<8x1xf32>
    %12 = vector.extract_strided_slice %1 {offsets = [1, 0], sizes = [1, 512], strides = [1, 1]} : vector<4x512xf32> to vector<1x512xf32>
    %13 = vector.broadcast %11 : vector<8x1xf32> to vector<8x512xf32>
    %14 = vector.broadcast %12 : vector<1x512xf32> to vector<8x512xf32>
    %15 = arith.mulf %13, %14 : vector<8x512xf32>
    %16 = arith.addf %10, %15 : vector<8x512xf32>
    %17 = vector.extract_strided_slice %2 {offsets = [0, 2], sizes = [8, 1], strides = [1, 1]} : vector<8x4xf32> to vector<8x1xf32>
    %18 = vector.extract_strided_slice %1 {offsets = [2, 0], sizes = [1, 512], strides = [1, 1]} : vector<4x512xf32> to vector<1x512xf32>
    %19 = vector.broadcast %17 : vector<8x1xf32> to vector<8x512xf32>
    %20 = vector.broadcast %18 : vector<1x512xf32> to vector<8x512xf32>
    %21 = arith.mulf %19, %20 : vector<8x512xf32>
    %22 = arith.addf %16, %21 : vector<8x512xf32>
    %23 = vector.extract_strided_slice %2 {offsets = [0, 3], sizes = [8, 1], strides = [1, 1]} : vector<8x4xf32> to vector<8x1xf32>
    %24 = vector.extract_strided_slice %1 {offsets = [3, 0], sizes = [1, 512], strides = [1, 1]} : vector<4x512xf32> to vector<1x512xf32>
    %25 = vector.broadcast %23 : vector<8x1xf32> to vector<8x512xf32>
    %26 = vector.broadcast %24 : vector<1x512xf32> to vector<8x512xf32>
    %27 = arith.mulf %25, %26 : vector<8x512xf32>
    %28 = arith.addf %22, %27 : vector<8x512xf32>
    %cst = arith.constant 0.000000e+00 : f32
    %29 = vector.broadcast %cst : f32 to vector<8x512xf32>
    %30 = arith.maximumf %28, %29 : vector<8x512xf32>
    %c0_6 = arith.constant 0 : index
    %c0_7 = arith.constant 0 : index
    %c0_8 = arith.constant 0 : index
    %31 = vector.load %arg5[%c0_6, %c0_7, %c0_8] : memref<1x8x512xf32, #tpu.memory_space<vmem>>, vector<1x8x512xf32>
    %32 = vector.shape_cast %31 : vector<1x8x512xf32> to vector<8x512xf32>
    %33 = vector.shape_cast %30 : vector<8x512xf32> to vector<1x8x512xf32>
    tpu.vector_store %arg5[%c0_6, %c0_7, %c0_8], %33 {strides = array<i32>} : memref<1x8x512xf32, #tpu.memory_space<vmem>>, vector<1x8x512xf32>,
    return
  }
  func.func @transform_0(%arg0: i32, %arg1: i32) -> (i32, i32, i32) {
    %c0_i32 = arith.constant 0 : i32
    %c0_i32_0 = arith.constant 0 : i32
    return %arg0, %c0_i32, %arg1 : i32, i32, i32
  }
  func.func @transform_1(%arg0: i32, %arg1: i32) -> (i32, i32) {
    %c0_i32 = arith.constant 0 : i32
    %c0_i32_0 = arith.constant 0 : i32
    %c0_i32_1 = arith.constant 0 : i32
    return %c0_i32, %c0_i32_0 : i32, i32
  }
  func.func @transform_2(%arg0: i32, %arg1: i32) -> (i32, i32) {
    %c0_i32 = arith.constant 0 : i32
    %c0_i32_0 = arith.constant 0 : i32
    %c0_i32_1 = arith.constant 0 : i32
    return %c0_i32, %c0_i32_0 : i32, i32
  }
  func.func @transform_3(%arg0: i32, %arg1: i32) -> (i32, i32, i32) {
    %c0_i32 = arith.constant 0 : i32
    %c0_i32_0 = arith.constant 0 : i32
    return %arg0, %c0_i32, %arg1 : i32, i32, i32
  }
}

</mosaic_0001>

<bundles_post_ra>
// kernel: upblock_forward.1
= control target key start
LH: loop header
LB: loop body
LE: loop exit
PB: predicated region body
PF: predicated region fallthrough
CT: control target
= control target key end

     0   :  { %s542_s12 = smov 0   ;;  %s544_s13 = smov 0   ;;  %s610_s0 = inlined_call_operand.vmem [shape: f32[2,4,1024], index: 0, kind: input, shape index: {}]   ;;  %s611_s1 = inlined_call_operand.vmem [shape: f32[8,4], index: 1, kind: input, shape index: {}]   ;;  %s612_s2 = inlined_call_operand.vmem [shape: f32[8,1], index: 2, kind: input, shape index: {}]   ;;  %s613_s3 = inlined_call_operand.vmem [shape: f32[2,8,1024], index: 3, kind: output, shape index: {}]  }
   0x1   :  { %s546_s14 = smov 0   ;;  %s548_s15 = smov 0  }
   0x2   :  { %s550_s16 = smov 0  }
   0x3 LB: > { %s22_s17 = sadd.s32 1, %s508_s14  ;;  %s25_s18 = sadd.s32 1, %s512_s15  ;;  %s516_s16 = sphi %s550_s16, %s13_s16   ;;  %s512_s15 = sphi %s548_s15, %s617_s15   ;;  %s508_s14 = sphi %s546_s14, %s616_s14   ;;  %s504_s13 = sphi %s544_s13, %s615_s13   ;;  %s500_s12 = sphi %s542_s12, %s614_s12  }
   0x4   : > { %p23_p0 = scmp.ge.s32.totalorder %s22_s17, 2  ;;  %p420_p1 = scmp.ge.s32.totalorder %s516_s16, 1 }
   0x5   : > { %p158_p2 = scmp.lt.s32.totalorder %s516_s16, 5 }
   0x6   : > { %s619_s17 = smov (%p23_p0, %s22_s17), 0  ;;  %s621_s18 = smov (!%p23_p0, %s25_s18), %s512_s15 }
   0x7   : > { %p159_p3 = pnand %p420_p1, %p158_p2  ;;  %p27_p4 = scmp.ge.s32.totalorder %s621_s18, 2 }
   0x8   : > { %s421_s23 = sshll.u32 (!%p159_p3), %s500_s12, 2  ;;  %p191_p5 = scmp.lt.s32.totalorder (!%p159_p3), %s504_s13, 1 }
   0x9   : > { %s623_s18 = smov (%p27_p4, %s621_s18), 0  ;;  %162 = sbr.rel (%p159_p3) target bundleno = 153 (0x99), region = 32 }
   0xa   : > { %p193_p6 = scmp.lt.s32.totalorder (!%p159_p3), %s421_s23, 7 }
   0xe   : > { %v212_v0 = vld [vmem:[%s611_s1] sm:$0xff]  ;;  %v518_v1 = vmov 0   ;;  %v519_v2 = vmov 1   ;;  %v520_v3 = vmov 3   ;;  %v521_v5 = vmov 2   ;;  %s625_s13 = smov (!%p191_p5, %s504_s13), 1 }
   0xf   : > { %473 = vset.pattern.permute.xlu0 %v518_v1  ;;  %474 = vset.pattern.permute.xlu1 %v519_v2  ;;  %v213_v4 = vld [vmem:[%s612_s2] sm:$0xff]  ;;  %s627_s23 = smov (!%p193_p6, %s421_s23), 7  ;;  %s422_s24 = sshll.u32 %s625_s13, 3 }
  0x10   : > { %216 = vperm.xlu0 %473, %v212_v0   ;;  %247 = vperm.xlu1 %474, %v212_v0   ;;  %s585_s25 = sadd.s32 %s422_s24, %s627_s23 }
  0x11   : > { %476 = vset.pattern.permute.xlu2 %v520_v3  ;;  %s423_s26 = sshll.u32 %s585_s25, 2  ;;  %s426_s30 = sshll.u32 %s585_s25, 3 }
  0x12   : > { %295 = vperm.xlu2 %476, %v212_v0   ;;  %s198_s29 = scalar_lea.vmem %s610_s0, %s423_s26  ;;  %s208_s6 = scalar_lea.vmem %s613_s3, %s426_s30 }
  0x13   : > { %v210_v6 = vld [vmem:[%s198_s29] sm:$0xff]  ;;  %v211_v7 = vld [vmem:[%s198_s29 + $0x8] sm:$0xff] }
  0x14   : > { %v298_v8 = vperm.slane %v210_v6, 3  ;;  %v299_v9 = vperm.slane %v210_v6, 7  ;;  %v300_v10 = vperm.slane %v211_v7, 3  ;;  %v301_v11 = vperm.slane %v211_v7, 7 }
  0x15   : > { %v221_v12 = vperm.slane %v210_v6, 0  ;;  %v222_v13 = vperm.slane %v210_v6, 4  ;;  %v223_v14 = vperm.slane %v211_v7, 0  ;;  %v224_v15 = vperm.slane %v211_v7, 4 }
  0x16   : > { %v250_v18 = vperm.slane %v210_v6, 1  ;;  %v251_v19 = vperm.slane %v210_v6, 5  ;;  %v252_v20 = vperm.slane %v211_v7, 1  ;;  %v253_v21 = vperm.slane %v211_v7, 5 }
  0x17   : > { %v274_v22 = vperm.slane %v210_v6, 2  ;;  %v275_v23 = vperm.slane %v210_v6, 6  ;;  %v276_v24 = vperm.slane %v211_v7, 2  ;;  %v277_v25 = vperm.slane %v211_v7, 6 }
  0x18   : > { %239 = vperm.xlu0 %473, %v213_v4   ;;  %475 = vset.pattern.permute.xlu1 %v521_v5  ;;  %v306_v26 = vperm.slane %v298_v8, 3  ;;  %v307_v27 = vperm.slane %v299_v9, 3  ;;  %v308_v28 = vperm.slane %v300_v10, 3  ;;  %v309_v29 = vperm.slane %v301_v11, 3 }
  0x19   : > { %271 = vperm.xlu1 %475, %v212_v0   ;;  %v229_v30 = vperm.slane %v221_v12, 0  ;;  %v230_v31 = vperm.slane %v222_v13, 0  ;;  %v231_v32 = vperm.slane %v223_v14, 0  ;;  %v232_v33 = vperm.slane %v224_v15, 0 }
  0x1a   : > { %v258_v35 = vperm.slane %v250_v18, 1  ;;  %v259_v36 = vperm.slane %v251_v19, 1  ;;  %v260_v37 = vperm.slane %v252_v20, 1  ;;  %v261_v38 = vperm.slane %v253_v21, 1 }
  0x1b   : > { %v282_v39 = vperm.slane %v274_v22, 2  ;;  %v283_v40 = vperm.slane %v275_v23, 2  ;;  %v284_v41 = vperm.slane %v276_v24, 2  ;;  %v285_v42 = vperm.slane %v277_v25, 2 }
  0x20   : > { %477 = vset.pattern.permute.xlu0 %v520_v3 }
  0x6c   : > { %v296_v34 = vpop.permute.xlu2 %295 }
  0x6d   : > { %v310_v43 = vmul.f32 %v306_v26, %v296_v34  ;;  %v311_v44 = vmul.f32 %v307_v27, %v296_v34  ;;  %v312_v45 = vmul.f32 %v308_v28, %v296_v34  ;;  %v313_v46 = vmul.f32 %v309_v29, %v296_v34 }
  0x82   : > { %v217_v16 = vpop.permute.xlu0 %216  ;;  %v248_v17 = vpop.permute.xlu1 %247 }
  0x83   : > { %v233_v47 = vmul.f32 %v229_v30, %v217_v16  ;;  %v234_v48 = vmul.f32 %v230_v31, %v217_v16  ;;  %v235_v49 = vmul.f32 %v231_v32, %v217_v16  ;;  %v236_v50 = vmul.f32 %v232_v33, %v217_v16 }
  0x84   : > { %v262_v51 = vmul.f32 %v258_v35, %v248_v17  ;;  %v263_v52 = vmul.f32 %v259_v36, %v248_v17  ;;  %v264_v53 = vmul.f32 %v260_v37, %v248_v17  ;;  %v265_v54 = vmul.f32 %v261_v38, %v248_v17 }
  0x8a   : > { %v240_v55 = vpop.permute.xlu0 %239 }
  0x8b   : > { %v242_v56 = vadd.f32 %v240_v55, %v233_v47  ;;  %v243_v57 = vadd.f32 %v240_v55, %v234_v48  ;;  %v244_v58 = vadd.f32 %v240_v55, %v235_v49  ;;  %v245_v59 = vadd.f32 %v240_v55, %v236_v50  ;;  %v272_v60 = vpop.permute.xlu1 %271 }
  0x8c   : > { %v286_v61 = vmul.f32 %v282_v39, %v272_v60  ;;  %v287_v62 = vmul.f32 %v283_v40, %v272_v60  ;;  %v288_v63 = vmul.f32 %v284_v41, %v272_v60  ;;  %v289_v0 = vmul.f32 %v285_v42, %v272_v60 }
  0x8d   : > { %v266_v1 = vadd.f32 %v262_v51, %v242_v56  ;;  %v267_v2 = vadd.f32 %v263_v52, %v243_v57  ;;  %v268_v3 = vadd.f32 %v264_v53, %v244_v58  ;;  %v269_v4 = vadd.f32 %v265_v54, %v245_v59 }
  0x8f   : > { %v290_v5 = vadd.f32 %v286_v61, %v266_v1  ;;  %v291_v6 = vadd.f32 %v287_v62, %v267_v2  ;;  %v292_v7 = vadd.f32 %v288_v63, %v268_v3  ;;  %v293_v8 = vadd.f32 %v289_v0, %v269_v4 }
  0x91   : > { %v314_v9 = vadd.f32 %v310_v43, %v290_v5  ;;  %v315_v10 = vadd.f32 %v311_v44, %v291_v6  ;;  %v316_v11 = vadd.f32 %v312_v45, %v292_v7  ;;  %v317_v12 = vadd.f32 %v313_v46, %v293_v8 }
  0x93   : > { %v318_v13 = vmax.f32 %v314_v9, 0.0  ;;  %v319_v14 = vmax.f32 %v315_v10, 0.0  ;;  %v320_v15 = vmax.f32 %v316_v11, 0.0  ;;  %v321_v16 = vmax.f32 %v317_v12, 0.0 }
  0x95   : > { %322 = vst [vmem:[%s208_s6] sm:$0xff] %v318_v13 }
  0x96   : > { %323 = vst [vmem:[%s208_s6 + $0x8] sm:$0xff] %v319_v14 }
  0x97   : > { %324 = vst [vmem:[%s208_s6 + $0x10] sm:$0xff] %v320_v15 }
  0x98   : > { %325 = vst [vmem:[%s208_s6 + $0x18] sm:$0xff] %v321_v16 }
  0x99 PF: > { %s13_s16 = sadd.s32 1, %s516_s16   ;;  %s614_s12 = smov %s508_s14 }
  0x9a   : > { %p10_p7 = scmp.ge.s32.totalorder %s13_s16, 6   ;;  %s615_s13 = smov %s512_s15 }
  0x9b   : > { %s616_s14 = smov %s619_s17  ;;  %s617_s15 = smov %s623_s18 }
  0x9c   :  { %12 = sbr.rel (!%p10_p7) target bundleno = 3 (0x3), region = 62 }

</bundles_post_ra>
